<compile_context>
chip_gen: v7x
topology: tpu7x:2x2x1
jax: 0.10.0
libtpu: 0.0.40
codegen_flags: <defaults>
</compile_context>

<pallas_src>
import functools

import jax
import jax.numpy as jnp
from jax.experimental import pallas as pl
from jax.experimental.pallas import tpu as pltpu

HIDDEN = 256
_LANE = 128


def _critic_kernel(x_ref, w1_ref, b1_ref, w2t_ref, b2_ref, o_ref):
    # fc1 on the MXU: (tb, D) @ (D, 256) -> (tb, 256), f32 accumulation.
    h = jnp.dot(x_ref[...], w1_ref[...], preferred_element_type=jnp.float32)
    h = jnp.maximum(h + b1_ref[...], 0.0)                      # bias + ReLU (VPU, f32)
    # fc2 also on the MXU: (tb, 256) @ (256, 1) -> (tb, 1).  Keeps the hidden
    # reduction off the XLU (likely the binding slot when state_dim is small).
    v = jnp.dot(h, w2t_ref[...], preferred_element_type=jnp.float32)
    # Single small sublane->lane relayout, then lane-dense (1, tb) store.
    o_ref[...] = (v.T + b2_ref[0, 0]).astype(o_ref.dtype)


def _vmem_budget_bytes():
    """~75% of physical VMEM for this TPU generation (fallback: v7x's 64 MiB)."""
    try:
        cap = int(pltpu.get_tpu_info().vmem_capacity_bytes)
    except Exception:
        cap = 64 * 1024 * 1024
    return (cap * 3) // 4


def _choose_tile(B, D, block_b, x_itemsize, budget):
    """Batch tile: large (amortize ~600-cycle per-step overhead), lane-aligned,
    VMEM-budgeted, and >= 2 grid steps when B >= 256 (v7x two-TC split)."""
    if B <= _LANE:
        return B                                        # single whole-batch block
    fixed = 2 * (D * HIDDEN + 2 * HIDDEN) * 4 + (4 << 20)     # weights/biases + slack
    per_row = 2 * D * x_itemsize + 2 * 4                # x dbl-buffer + out dbl-buffer
    max_rows = max(_LANE, (budget - fixed) // per_row)
    tb = min(int(block_b), int(max_rows))
    if B >= 256:                                        # guarantee >= 2 steps (megacore)
        tb = min(tb, pl.cdiv(pl.cdiv(B, 2), _LANE) * _LANE)
    tb = min(tb, pl.cdiv(B, _LANE) * _LANE)             # never exceed round_up(B, 128)
    tb = max(_LANE, (tb // _LANE) * _LANE)              # lane multiple
    return tb


@functools.partial(jax.jit, static_argnames=("block_b",))
def critic_forward(state, w1, b1, w2t, b2, *, block_b=2048):
    """state: (B, D); w1: (D, 256); b1: (1, 256) f32; w2t: (256, 1); b2: (1, 1) f32.
    Returns (B, 1) f32 == fc2(relu(fc1(state)))."""
    B, D = state.shape
    budget = _vmem_budget_bytes()
    x_itemsize = jnp.dtype(state.dtype).itemsize
    tb = _choose_tile(B, D, block_b, x_itemsize, budget)
    grid = (pl.cdiv(B, tb),)

    need = (2 * tb * D * x_itemsize                 # x double buffer
            + 2 * tb * 4                            # (1, tb) output double buffer
            + 2 * (D * HIDDEN + 2 * HIDDEN) * 4)    # w1 / b1 / w2t (x2, conservative)
    vmem_limit = int(min(budget, max(32 * 1024 * 1024, need + (4 << 20))))

    # TODO(synk): if xprof still shows exposed x DMA at large tb, add
    # pipeline_mode=pl.Buffered(3) to the x BlockSpec (cheap: tiles are small).
    out = pl.pallas_call(
        _critic_kernel,
        out_shape=jax.ShapeDtypeStruct((1, B), jnp.float32),
        grid=grid,
        in_specs=[
            pl.BlockSpec((tb, D), lambda i: (i, 0)),            # x: batch-tiled (ragged edge masked)
            pl.BlockSpec((D, HIDDEN), lambda i: (0, 0)),        # w1: VMEM-resident
            pl.BlockSpec((1, HIDDEN), lambda i: (0, 0)),        # b1: VMEM-resident
            pl.BlockSpec((HIDDEN, 1), lambda i: (0, 0)),        # w2t: VMEM-resident
            pl.BlockSpec(memory_space=pltpu.MemorySpace.SMEM),  # b2: scalar in SMEM
        ],
        out_specs=pl.BlockSpec((1, tb), lambda i: (0, i)),      # lane-dense output row
        compiler_params=pltpu.CompilerParams(
            dimension_semantics=("parallel",),                  # megacore split on v7x
            vmem_limit_bytes=vmem_limit),
    )(state, w1, b1, w2t, b2)

    return out.reshape(B, 1)


def init_critic_params(key, state_dim):
    """Deterministic PyTorch-style uniform(+/- 1/sqrt(fan_in)) initialization."""
    k1, k2, k3, k4 = jax.random.split(key, 4)
    bound1 = 1.0 / jnp.sqrt(state_dim)
    bound2 = 1.0 / jnp.sqrt(HIDDEN)
    w1 = jax.random.uniform(k1, (state_dim, HIDDEN), jnp.float32, -bound1, bound1)
    b1 = jax.random.uniform(k2, (1, HIDDEN), jnp.float32, -bound1, bound1)
    w2t = jax.random.uniform(k3, (HIDDEN, 1), jnp.float32, -bound2, bound2)  # fc2.weight.T
    b2 = jax.random.uniform(k4, (1, 1), jnp.float32, -bound2, bound2)        # fc2.bias
    return w1, b1, w2t, b2


if __name__ == "__main__":
    key = jax.random.PRNGKey(0)
    k_x, k_p, k_x2 = jax.random.split(key, 3)

    state_dim = 32
    w1, b1, w2t, b2 = init_critic_params(k_p, state_dim)

    def reference(x):
        h = jnp.maximum(x @ w1 + b1, 0.0)
        return h @ w2t + b2

    # Small batch: single grid step, whole-array blocks.
    state = jax.random.normal(k_x, (4, state_dim), jnp.float32)
    out = jax.block_until_ready(critic_forward(state, w1, b1, w2t, b2))
    assert out.shape == (4, 1)
    assert jnp.allclose(out, reference(state), atol=1e-5, rtol=1e-5)

    # Non-aligned batch, default (large) tile: tb=256 -> 2 grid steps (v7x 2-TC
    # split); ragged last block handled by Pallas masking (no host-side pad).
    state2 = jax.random.normal(k_x2, (300, state_dim), jnp.float32)
    out2 = jax.block_until_ready(critic_forward(state2, w1, b1, w2t, b2))
    assert out2.shape == (300, 1)
    assert jnp.allclose(out2, reference(state2), atol=1e-4, rtol=1e-4)

    # Same batch with a small tile: 3 grid steps, exercises the multi-step +
    # ragged-edge path of the pipeline.
    out3 = jax.block_until_ready(critic_forward(state2, w1, b1, w2t, b2, block_b=128))
    assert out3.shape == (300, 1)
    assert jnp.allclose(out3, reference(state2), atol=1e-4, rtol=1e-4)

    print("KERNEL_OK")
</pallas_src>

<mosaic_0001>
module attributes {stable_mosaic.version = 11 : i64} {
  func.func @_critic_kernel(%arg0: i32, %arg1: memref<4x32xf32, #tpu.memory_space<vmem>>, %arg2: memref<32x256xf32, #tpu.memory_space<vmem>>, %arg3: memref<1x256xf32, #tpu.memory_space<vmem>>, %arg4: memref<256x1xf32, #tpu.memory_space<vmem>>, %arg5: memref<1x1xf32, #tpu.memory_space<smem>>, %arg6: memref<1x4xf32, #tpu.memory_space<vmem>>) attributes {dimension_semantics = [#tpu.dimension_semantics<parallel>], iteration_bounds = array<i64: 1>, scalar_prefetch = 0 : i64, scratch_operands = 0 : i64, tpu.core_type = #tpu.core_type<tc>, window_params = [{transform_indices = @transform_0, window_bounds = array<i64: 4, 32>}, {pipeline_mode = #tpu.pipeline_mode<synchronous>, transform_indices = @transform_1, window_bounds = array<i64: 32, 256>}, {pipeline_mode = #tpu.pipeline_mode<synchronous>, transform_indices = @transform_2, window_bounds = array<i64: 1, 256>}, {pipeline_mode = #tpu.pipeline_mode<synchronous>, transform_indices = @transform_3, window_bounds = array<i64: 256, 1>}, {transform_indices = @transform_4, window_bounds = array<i64: 1, 1>}, {transform_indices = @transform_5, window_bounds = array<i64: 1, 4>}]} {
    %c0 = arith.constant 0 : index
    %c0_0 = arith.constant 0 : index
    %0 = vector.load %arg1[%c0, %c0_0] : memref<4x32xf32, #tpu.memory_space<vmem>>, vector<4x32xf32>
    %c0_1 = arith.constant 0 : index
    %c0_2 = arith.constant 0 : index
    %1 = vector.load %arg2[%c0_1, %c0_2] : memref<32x256xf32, #tpu.memory_space<vmem>>, vector<32x256xf32>
    %cst = arith.constant dense<0.000000e+00> : vector<4x256xf32>
    %2 = tpu.matmul %0, %1, %cst {dimension_numbers = #tpu.dot_dimension_numbers<[1], [0], [0], [1], [0, 0, 1, 1], [], []>} : vector<4x32xf32>, vector<32x256xf32>, vector<4x256xf32> -> vector<4x256xf32>
    %c0_3 = arith.constant 0 : index
    %c0_4 = arith.constant 0 : index
    %3 = vector.load %arg3[%c0_3, %c0_4] : memref<1x256xf32, #tpu.memory_space<vmem>>, vector<1x256xf32>
    %4 = vector.broadcast %3 : vector<1x256xf32> to vector<4x256xf32>
    %5 = arith.addf %2, %4 : vector<4x256xf32>
    %cst_5 = arith.constant 0.000000e+00 : f32
    %6 = vector.broadcast %cst_5 : f32 to vector<4x256xf32>
    %7 = arith.maximumf %5, %6 : vector<4x256xf32>
    %c0_6 = arith.constant 0 : index
    %c0_7 = arith.constant 0 : index
    %8 = vector.load %arg4[%c0_6, %c0_7] : memref<256x1xf32, #tpu.memory_space<vmem>>, vector<256x1xf32>
    %cst_8 = arith.constant dense<0.000000e+00> : vector<4x1xf32>
    %9 = tpu.matmul %7, %8, %cst_8 {dimension_numbers = #tpu.dot_dimension_numbers<[1], [0], [0], [1], [0, 0, 1, 1], [], []>} : vector<4x256xf32>, vector<256x1xf32>, vector<4x1xf32> -> vector<4x1xf32>
    %10 = tpu.transpose %9, [1, 0] : vector<4x1xf32> -> vector<1x4xf32>
    %c0_9 = arith.constant 0 : index
    %c0_10 = arith.constant 0 : index
    %11 = memref.load %arg5[%c0_9, %c0_10] : memref<1x1xf32, #tpu.memory_space<smem>>
    %12 = vector.broadcast %11 : f32 to vector<1x4xf32>
    %13 = arith.addf %10, %12 : vector<1x4xf32>
    %c0_11 = arith.constant 0 : index
    %c0_12 = arith.constant 0 : index
    %14 = vector.load %arg6[%c0_11, %c0_12] : memref<1x4xf32, #tpu.memory_space<vmem>>, vector<1x4xf32>
    tpu.vector_store %arg6[%c0_11, %c0_12], %13 {strides = array<i32>} : memref<1x4xf32, #tpu.memory_space<vmem>>, vector<1x4xf32>,
    return
  }
  func.func @transform_0(%arg0: i32) -> (i32, i32) {
    %c0_i32 = arith.constant 0 : i32
    %c0_i32_0 = arith.constant 0 : i32
    return %arg0, %c0_i32 : i32, i32
  }
  func.func @transform_1(%arg0: i32) -> (i32, i32) {
    %c0_i32 = arith.constant 0 : i32
    %c0_i32_0 = arith.constant 0 : i32
    %c0_i32_1 = arith.constant 0 : i32
    return %c0_i32, %c0_i32_0 : i32, i32
  }
  func.func @transform_2(%arg0: i32) -> (i32, i32) {
    %c0_i32 = arith.constant 0 : i32
    %c0_i32_0 = arith.constant 0 : i32
    %c0_i32_1 = arith.constant 0 : i32
    return %c0_i32, %c0_i32_0 : i32, i32
  }
  func.func @transform_3(%arg0: i32) -> (i32, i32) {
    %c0_i32 = arith.constant 0 : i32
    %c0_i32_0 = arith.constant 0 : i32
    %c0_i32_1 = arith.constant 0 : i32
    return %c0_i32, %c0_i32_0 : i32, i32
  }
  func.func @transform_4(%arg0: i32) -> (i32, i32) {
    %c0_i32 = arith.constant 0 : i32
    %c0_i32_0 = arith.constant 0 : i32
    %c0_i32_1 = arith.constant 0 : i32
    return %c0_i32, %c0_i32_0 : i32, i32
  }
  func.func @transform_5(%arg0: i32) -> (i32, i32) {
    %c0_i32 = arith.constant 0 : i32
    %c0_i32_0 = arith.constant 0 : i32
    return %c0_i32, %arg0 : i32, i32
  }
}

</mosaic_0001>

<bundles_post_ra>
// kernel: critic_forward.1
= control target key start
LH: loop header
LB: loop body
LE: loop exit
PB: predicated region body
PF: predicated region fallthrough
CT: control target
= control target key end

     0   :  { %v375_v7 = vmov 0.0   ;;  %vm43_vm0 = vcmask 261120   ;;  %s548_s0 = inlined_call_operand.vmem [shape: f32[4,32], index: 0, kind: input, shape index: {}]   ;;  %s549_s1 = inlined_call_operand.vmem [shape: f32[32,256], index: 1, kind: input, shape index: {}]   ;;  %s550_s2 = inlined_call_operand.vmem [shape: f32[1,256], index: 2, kind: input, shape index: {}]   ;;  %s551_s3 = inlined_call_operand.vmem [shape: f32[256,1], index: 3, kind: input, shape index: {}]   ;;  %s552_s4 = inlined_call_operand.<no memory space> [shape: f32[1,1], index: 4, kind: input, shape index: {}]   ;;  %s553_s5 = inlined_call_operand.hbm [shape: f32[1,4], index: 5, kind: output, shape index: {}]  }
   0x1   :  { %v24_v0 = vld [vmem:[%s549_s1 + $0x8] sm:$0xff]  ;;  %v26_v1 = vld [vmem:[%s549_s1 + $0x18] sm:$0xff]  ;;  %v23_v2 = vld [vmem:[%s549_s1] sm:$0xff]  ;;  %111 = vmatprep.mubr.f32.mxu0 %v375_v7 }
   0x2   :  { %v309_v3 = vpack.c.bf16 %v26_v1, %v24_v0  ;;  %v25_v4 = vld [vmem:[%s549_s1 + $0x10] sm:$0xff]  ;;  %v28_v5 = vld [vmem:[%s549_s1 + $0x28] sm:$0xff]  ;;  %v30_v6 = vld [vmem:[%s549_s1 + $0x38] sm:$0xff] }
   0x3   :  { %v311_v8 = vpack.c.bf16 %v25_v4, %v23_v2  ;;  %v313_v9 = vpack.c.bf16 %v30_v6, %v28_v5  ;;  %v27_v10 = vld [vmem:[%s549_s1 + $0x20] sm:$0xff]  ;;  %v29_v11 = vld [vmem:[%s549_s1 + $0x30] sm:$0xff]  ;;  %v137_v13 = vld [vmem:[%s551_s3 + $0x88] sm:$0xff] }
   0x4   :  { %310 = vmatprep.subr.bf16.mxu0 %v309_v3  ;;  %v136_v12 = vld [vmem:[%s551_s3 + $0x80] sm:$0xff]  ;;  %v315_v15 = vpack.c.bf16 %v29_v11, %v27_v10  ;;  %v121_v17 = vld [vmem:[%s551_s3 + $0x8] sm:$0xff]  ;;  %v138_v18 = vld [vmem:[%s551_s3 + $0x90] sm:$0xff] }
   0x5   :  { %v120_v14 = vld [vmem:[%s551_s3] sm:$0xff]  ;;  %312 = vmatpush1.bf16.msra.mxu0 %v311_v8  ;;  %v317_v16 = vpack.c.bf16 %v137_v13, %v136_v12  ;;  %v139_v19 = vld [vmem:[%s551_s3 + $0x98] sm:$0xff]  ;;  %v122_v22 = vld [vmem:[%s551_s3 + $0x10] sm:$0xff] }
   0x6   :  { %314 = vmatprep.subr.bf16.mxu0 %v313_v9  ;;  %v319_v20 = vpack.c.bf16 %v121_v17, %v120_v14  ;;  %v321_v21 = vpack.c.bf16 %v139_v19, %v138_v18  ;;  %v123_v23 = vld [vmem:[%s551_s3 + $0x18] sm:$0xff]  ;;  %v140_v24 = vld [vmem:[%s551_s3 + $0xa0] sm:$0xff]  ;;  %v141_v25 = vld [vmem:[%s551_s3 + $0xa8] sm:$0xff] }
   0x7   :  { %318 = vmatprep.subr.bf16.mxu1 %v317_v16  ;;  %v323_v26 = vpack.c.bf16 %v123_v23, %v122_v22  ;;  %v22_v27 = vld [vmem:[%s548_s0] sm:$0xf]  ;;  %v325_v28 = vpack.c.bf16 %v141_v25, %v140_v24  ;;  %v125_v30 = vld [vmem:[%s551_s3 + $0x28] sm:$0xff]  ;;  %v142_v31 = vld [vmem:[%s551_s3 + $0xb0] sm:$0xff] }
   0x8   :  { %320 = vmatpush3.bf16.msra.mxu1 %v319_v20  ;;  %v124_v29 = vld [vmem:[%s551_s3 + $0x20] sm:$0xff]  ;;  %v143_v32 = vld [vmem:[%s551_s3 + $0xb8] sm:$0xff]  ;;  %v126_v35 = vld [vmem:[%s551_s3 + $0x30] sm:$0xff] }
   0x9   :  { %316 = vmatpush1.bf16.msra.mxu0 %v315_v15  ;;  %322 = vmatprep.subr.bf16.mxu1 %v321_v21  ;;  %v327_v33 = vpack.c.bf16 %v125_v30, %v124_v29  ;;  %v329_v34 = vpack.c.bf16 %v143_v32, %v142_v31  ;;  %v127_v36 = vld [vmem:[%s551_s3 + $0x38] sm:$0xff] }
   0xc   :  { %273 = vmatmul.mubr.msk.f32.vlgmr.msra.gmra.mrb[0].mxu0 %vm43_vm0, %v22_v27  ;;  %324 = vmatpush3.bf16.msra.mxu1 %v323_v26 }
   0xd   :  { %326 = vmatprep.subr.bf16.mxu1 %v325_v28 }
   0xe   :  { %11 = vsyncpa [#allocation4], 0  ;;  %v144_v37 = vld [vmem:[%s551_s3 + $0xc0] sm:$0xff]  ;;  %v145_v38 = vld [vmem:[%s551_s3 + $0xc8] sm:$0xff]  ;;  %v331_v39 = vpack.c.bf16 %v127_v36, %v126_v35  ;;  %v33_v62 = vlaneseq  ;;  %v255_v14 = vstv %s552_s4  ;;  %vm257_vm1 = vcmask 24576  }
   0xf   :  { %v333_v40 = vpack.c.bf16 %v145_v38, %v144_v37  ;;  %v128_v41 = vld [vmem:[%s551_s3 + $0x40] sm:$0xff]  ;;  %v129_v42 = vld [vmem:[%s551_s3 + $0x48] sm:$0xff]  ;;  %v146_v43 = vld [vmem:[%s551_s3 + $0xd0] sm:$0xff] }
  0x10   :  { %328 = vmatpush3.bf16.msra.mxu1 %v327_v33  ;;  %v147_v44 = vld [vmem:[%s551_s3 + $0xd8] sm:$0xff]  ;;  %v335_v45 = vpack.c.bf16 %v129_v42, %v128_v41  ;;  %v130_v47 = vld [vmem:[%s551_s3 + $0x50] sm:$0xff]  ;;  %v148_v49 = vld [vmem:[%s551_s3 + $0xe0] sm:$0xff]  ;;  %v34_v63 = vshrl.u32 %v33_v62, 7 }
  0x11   :  { %330 = vmatprep.subr.bf16.mxu1 %v329_v34  ;;  %v337_v46 = vpack.c.bf16 %v147_v44, %v146_v43  ;;  %v131_v48 = vld [vmem:[%s551_s3 + $0x58] sm:$0xff]  ;;  %v149_v50 = vld [vmem:[%s551_s3 + $0xe8] sm:$0xff]  ;;  %v132_v53 = vld [vmem:[%s551_s3 + $0x60] sm:$0xff] }
  0x12   :  { %v339_v51 = vpack.c.bf16 %v131_v48, %v130_v47  ;;  %v341_v52 = vpack.c.bf16 %v149_v50, %v148_v49  ;;  %v133_v54 = vld [vmem:[%s551_s3 + $0x68] sm:$0xff]  ;;  %v150_v56 = vld [vmem:[%s551_s3 + $0xf0] sm:$0xff]  ;;  %v151_v57 = vld [vmem:[%s551_s3 + $0xf8] sm:$0xff]  ;;  %v35_v0 = vsub.s32 0, %v34_v63  ;;  %v39_v2 = vsub.s32 1, %v34_v63 }
  0x13   :  { %v343_v55 = vpack.c.bf16 %v133_v54, %v132_v53  ;;  %v345_v58 = vpack.c.bf16 %v151_v57, %v150_v56  ;;  %v134_v59 = vld [vmem:[%s551_s3 + $0x70] sm:$0xff]  ;;  %v135_v60 = vld [vmem:[%s551_s3 + $0x78] sm:$0xff]  ;;  %v31_v1 = vld [vmem:[%s550_s2] sm:$0x3]  ;;  %s376_s2 = smov [#allocation3]  }
  0x14   :  { %332 = vmatpush3.bf16.msra.mxu1 %v331_v39  ;;  %v347_v61 = vpack.c.bf16 %v135_v60, %v134_v59  ;;  %v36_v3 = vrot.slane %v31_v1, %v35_v0  ;;  %v40_v4 = vrot.slane %v31_v1, %v39_v2  ;;  %s265_s23 = sshll.u32 %s376_s2, 4  ;;  %s266_s23 = int_to_ptr.vmem [resolvable:$true] %s265_s23 }
  0x15   :  { %334 = vmatprep.subr.bf16.mxu1 %v333_v40  ;;  %s351_s24 = scalar_lea.vmem %s266_s23, 16  ;;  %s355_s25 = scalar_lea.vmem %s266_s23, 32 }
  0x16   :  { %p352_p0 = scmp.ne.s32.totalorder %s266_s23, %s351_s24  ;;  %p356_p1 = scmp.lt.s32.totalorder %s266_s23, %s266_s23 }
  0x17   :  { %p357_p2 = scmp.lt.s32.totalorder %s355_s25, %s351_s24 }
  0x18   :  { %336 = vmatpush3.bf16.msra.mxu1 %v335_v45 }
  0x19   :  { %338 = vmatprep.subr.bf16.mxu1 %v337_v46  ;;  %p358_p3 = por %p357_p2, %p356_p1 }
  0x1b   :  { %p359_p4 = pnand %p358_p3, %p352_p0 }
  0x1c   :  { %340 = vmatpush3.bf16.msra.mxu1 %v339_v51 }
  0x1d   :  { %342 = vmatprep.subr.bf16.mxu1 %v341_v52 }
  0x20   :  { %344 = vmatpush3.bf16.msra.mxu1 %v343_v55 }
  0x21   :  { %346 = vmatprep.subr.bf16.mxu1 %v345_v58 }
  0x24   :  { %348 = vmatpush3.bf16.msra.mxu1 %v347_v61 }
  0xdf   :  { %v113_v5 = vpop.f32.mrb[0].mxu0 }
  0xe0   :  { %v114_v6 = vadd.f32 %v113_v5, %v36_v3  ;;  %v115_v7 = vpop.f32.mrb[1].mxu0 }
  0xe1   :  { %v116_v8 = vadd.f32 %v115_v7, %v40_v4 }
  0xe2   :  { %v118_v10 = vmax.f32 %v114_v6, 0.0 }
  0xe3   :  { %v119_v9 = vmax.f32 %v116_v8, 0.0 }
  0xe5   :  { %216 = vmatprep.mubr.f32.mxu1 %v119_v9 }
  0xe6   :  { %217 = vmatmul.mubr.f32.vlgmr.msra.gmra.mrb[0].mxu1 %v118_v10 }
 0x1b9   :  { %v306_v11 = vpop.f32.mrb[0].mxu1 }
 0x1ba   :  { %v307_v12 = vpop.f32.mrb[1].mxu1 }
 0x1bb   :  { %v308_v13 = vadd.f32 %v307_v12, %v306_v11 }
 0x1bd   :  { %222 = vxpose.xlu0.b32.start.end [1/1] (short) (narrow) %v308_v13, 8 }
 0x23d   :  { %v238_v15 = vpop.trf.xlu0 }
 0x23e   :  { %v256_v16 = vadd.f32 %v255_v14, %v238_v15 }
 0x240   :  { %258 = vst.msk [vmem:[#allocation3] sm:$0x1] %vm257_vm1, %v256_v16 }
 0x241   :  { %362 = shalt.err (!%p359_p4)
}
 0x242   :  { %s363_s28 = scalar_lea.hbm %s553_s5, 16 }
 0x243   :  { %p364_p5 = scmp.ne.s32.totalorder %s553_s5, %s363_s28  ;;  %p367_p6 = scmp.lt.u32.totalorder %s363_s28, %s553_s5 }
 0x245   :  { %p369_p7 = pnand %p367_p6, %p364_p5 }
 0x247   :  { %372 = shalt.err (!%p369_p7)
}
 0x248   :  { %268 = dma.vmem_to_hbm [thread:$0]  %s266_s23, 16, %s553_s5, [#allocation4]  }
 0x249   :  { %373 = dma.done.wait [#allocation4], 16  }
 0x24a   :  { %374 = vsyncadd [#allocation4], 4294967280 }
 0x24b   :  { %272 = vsyncpa [#allocation4], 1 }

</bundles_post_ra>
